<compile_context>
chip_gen: v6e
topology: v6e:2x2x1
jax: 0.10.0
libtpu: 0.0.40
codegen_flags: <defaults>
</compile_context>

<pallas_src>
import functools

import jax
import jax.numpy as jnp
from jax.experimental import pallas as pl
from jax.experimental.pallas import tpu as pltpu


def _conv1x1_kernel(x_ref, w_ref, b_ref, o_ref, *, compute_dtype):
    # x_ref: (tm, Dp), w_ref: (Dp, Op), b_ref: (1, Op), o_ref: (tm, Op)
    x = x_ref[...]
    w = w_ref[...]
    if compute_dtype is not None:          # optional bf16 multiplies (v5e MXU headroom)
        x = x.astype(compute_dtype)
        w = w.astype(compute_dtype)
    acc = jnp.dot(x, w, preferred_element_type=jnp.float32)
    o_ref[...] = (acc + b_ref[...].astype(jnp.float32)).astype(o_ref.dtype)


def _round_up(a, b):
    return ((a + b - 1) // b) * b


def spatial_cnn_forward(x, weight, bias, *, tm=8192, compute_dtype=None, out_dtype=None):
    """Forward of SpatialCNN.

    x:      (B, T, NM, D) activations.
    weight: (D, out_dim)  == torch conv.weight[:, :, 0].T
    bias:   (out_dim,)
    compute_dtype: optional matmul-input dtype (e.g. jnp.bfloat16 on v5e); None keeps f32.
    out_dtype:     optional output dtype (e.g. jnp.bfloat16); None keeps x.dtype.
    """
    B, T, NM, D = x.shape
    out_dim = weight.shape[1]
    M = B * T * NM
    out_dtype = x.dtype if out_dtype is None else jnp.dtype(out_dtype)

    # ---- lane-packing factor: reach a 128-wide (lane-dense) input row; never exceed
    # Dp == 128 since block-diag FLOPs scale with fold and the kernel is memory-bound.
    fold = (128 // D) if (D < 128 and 128 % D == 0) else 1

    # ---- non-divisible M: pad <= fold-1 rows (one tiny copy) rather than dropping the
    # fold and losing lane density / unmasked stores for the whole array.
    pad_rows = (-M) % fold
    Mp = M + pad_rows
    x2 = x.reshape(M, D)
    if pad_rows:
        x2 = jnp.pad(x2, ((0, pad_rows), (0, 0)))

    Dp = fold * D
    Op = fold * out_dim
    Mr = Mp // fold
    x2 = x2.reshape(Mr, Dp)                 # pure row-major reshape: free, no HBM copy

    if fold > 1:
        # Block-diagonal weight diag(W, ..., W): (fold*D, fold*out_dim).
        eye = jnp.eye(fold, dtype=weight.dtype)
        w_p = jnp.einsum("fg,do->fdgo", eye, weight).reshape(Dp, Op)
        b_p = jnp.tile(bias, fold).reshape(1, Op)
    else:
        w_p = weight
        b_p = bias.reshape(1, Op)

    # ---- row tiling ----
    # Sublane pack of the activation dtype: 8 (f32), 16 (bf16), 32 (int8/fp8).
    pack = max(8, 8 * (4 // jnp.dtype(x.dtype).itemsize))
    in_bytes = jnp.dtype(x.dtype).itemsize
    out_bytes = jnp.dtype(out_dtype).itemsize
    # Keep the double-buffered in+out tiles within ~40 MiB (headroom under the 48 MiB
    # scoped limit; safe on v7x's 64 MiB physical VMEM, trivially safe on v5e/v6e).
    vmem_budget = 40 * 1024 * 1024
    row_bytes = 2 * (Dp * in_bytes + Op * out_bytes)
    tm_cap = max(pack, (vmem_budget // row_bytes) // pack * pack)
    # Keep >= 2 grid steps when possible so the "parallel" axis shards across v7x's two
    # TensorCores (one extra ~0.35us step on single-TC chips: negligible).
    half = _round_up(-(-Mr // 2), pack)
    tm_eff = min(tm, tm_cap, half)
    grid = (pl.cdiv(Mr, tm_eff),)           # ragged last block handled by Pallas masking

    cost = pl.CostEstimate(
        flops=2 * M * D * out_dim,          # useful FLOPs (not fold-inflated)
        transcendentals=0,
        bytes_accessed=(M * D * in_bytes + Dp * Op * w_p.dtype.itemsize
                        + Op * b_p.dtype.itemsize + Mp * out_dim * out_bytes),
    )

    kernel = functools.partial(_conv1x1_kernel, compute_dtype=compute_dtype)

    def _run(single_buffer_consts):
        const_kwargs = {"pipeline_mode": pl.Buffered(1)} if single_buffer_consts else {}
        return pl.pallas_call(
            kernel,
            out_shape=jax.ShapeDtypeStruct((Mr, Op), out_dtype),
            grid_spec=pltpu.PrefetchScalarGridSpec(
                num_scalar_prefetch=0,
                grid=grid,
                in_specs=[
                    pl.BlockSpec((tm_eff, Dp), lambda i: (i, 0)),
                    pl.BlockSpec((Dp, Op), lambda i: (0, 0), **const_kwargs),
                    pl.BlockSpec((1, Op), lambda i: (0, 0), **const_kwargs),
                ],
                out_specs=pl.BlockSpec((tm_eff, Op), lambda i: (i, 0)),
            ),
            compiler_params=pltpu.CompilerParams(
                dimension_semantics=("parallel",),
                vmem_limit_bytes=48 * 1024 * 1024,
            ),
            cost_estimate=cost,
        )(x2, w_p, b_p)

    try:
        # Constant-index weight/bias blocks only need one buffer (reclaims VMEM).
        out2 = _run(True)
    except Exception:
        # pipeline_mode unsupported by the installed JAX -> default double buffering.
        out2 = _run(False)

    # (Mr, fold*out_dim) is row-major identical to (Mp, out_dim); drop pad rows.
    out = out2.reshape(Mp, out_dim)
    if pad_rows:
        out = out[:M]
    return out.reshape(B, T, NM, out_dim)


if __name__ == "__main__":
    key = jax.random.PRNGKey(0)
    kx, kw, kb, kx2 = jax.random.split(key, 4)

    # Small shapes consistent with the module's forward: x is (B, T, NM, D).
    B, T, NM = 2, 8, 16
    in_dim, out_dim = 32, 64

    x = jax.random.normal(kx, (B, T, NM, in_dim), dtype=jnp.float32)

    # Deterministic parameters mirroring nn.Conv1d(in_dim, out_dim, kernel_size=1):
    # PyTorch weight is (out_dim, in_dim, 1); we store its transpose (in_dim, out_dim).
    bound = 1.0 / (in_dim ** 0.5)
    weight = jax.random.uniform(kw, (in_dim, out_dim), dtype=jnp.float32,
                                minval=-bound, maxval=bound)
    bias = jax.random.uniform(kb, (out_dim,), dtype=jnp.float32,
                              minval=-bound, maxval=bound)

    out = spatial_cnn_forward(x, weight, bias)
    out = jax.block_until_ready(out)

    ref = jnp.einsum("btnd,do->btno", x, weight) + bias
    assert out.shape == (B, T, NM, out_dim)
    assert jnp.allclose(out, ref, atol=1e-4, rtol=1e-4)

    # Second check: M not divisible by fold (exercises the pad + slice path, keeping
    # full lane density instead of degrading to masked narrow stores).
    B2, T2, NM2 = 2, 3, 5
    x_odd = jax.random.normal(kx2, (B2, T2, NM2, in_dim), dtype=jnp.float32)
    out_odd = jax.block_until_ready(spatial_cnn_forward(x_odd, weight, bias))
    ref_odd = jnp.einsum("btnd,do->btno", x_odd, weight) + bias
    assert out_odd.shape == (B2, T2, NM2, out_dim)
    assert jnp.allclose(out_odd, ref_odd, atol=1e-4, rtol=1e-4)

    print("KERNEL_OK")
</pallas_src>

<mosaic_0001>
module attributes {stable_mosaic.version = 11 : i64} {
  func.func @_conv1x1_kernel(%arg0: i32, %arg1: memref<32x128xf32, #tpu.memory_space<vmem>>, %arg2: memref<128x256xf32, #tpu.memory_space<vmem>>, %arg3: memref<1x256xf32, #tpu.memory_space<vmem>>, %arg4: memref<32x256xf32, #tpu.memory_space<vmem>>) attributes {dimension_semantics = [#tpu.dimension_semantics<parallel>], iteration_bounds = array<i64: 2>, scalar_prefetch = 0 : i64, scratch_operands = 0 : i64, tpu.core_type = #tpu.core_type<tc>, window_params = [{transform_indices = @transform_0, window_bounds = array<i64: 32, 128>}, {pipeline_mode = #tpu.pipeline_mode<synchronous>, transform_indices = @transform_1, window_bounds = array<i64: 128, 256>}, {pipeline_mode = #tpu.pipeline_mode<synchronous>, transform_indices = @transform_2, window_bounds = array<i64: 1, 256>}, {transform_indices = @transform_3, window_bounds = array<i64: 32, 256>}]} {
    %c0 = arith.constant 0 : index
    %c0_0 = arith.constant 0 : index
    %0 = vector.load %arg1[%c0, %c0_0] : memref<32x128xf32, #tpu.memory_space<vmem>>, vector<32x128xf32>
    %c0_1 = arith.constant 0 : index
    %c0_2 = arith.constant 0 : index
    %1 = vector.load %arg2[%c0_1, %c0_2] : memref<128x256xf32, #tpu.memory_space<vmem>>, vector<128x256xf32>
    %cst = arith.constant dense<0.000000e+00> : vector<32x256xf32>
    %2 = tpu.matmul %0, %1, %cst {dimension_numbers = #tpu.dot_dimension_numbers<[1], [0], [0], [1], [0, 0, 1, 1], [], []>} : vector<32x128xf32>, vector<128x256xf32>, vector<32x256xf32> -> vector<32x256xf32>
    %c0_3 = arith.constant 0 : index
    %c0_4 = arith.constant 0 : index
    %3 = vector.load %arg3[%c0_3, %c0_4] : memref<1x256xf32, #tpu.memory_space<vmem>>, vector<1x256xf32>
    %4 = vector.broadcast %3 : vector<1x256xf32> to vector<32x256xf32>
    %5 = arith.addf %2, %4 : vector<32x256xf32>
    %c0_5 = arith.constant 0 : index
    %c0_6 = arith.constant 0 : index
    %6 = vector.load %arg4[%c0_5, %c0_6] : memref<32x256xf32, #tpu.memory_space<vmem>>, vector<32x256xf32>
    tpu.vector_store %arg4[%c0_5, %c0_6], %5 {strides = array<i32>} : memref<32x256xf32, #tpu.memory_space<vmem>>, vector<32x256xf32>,
    return
  }
  func.func @transform_0(%arg0: i32) -> (i32, i32) {
    %c0_i32 = arith.constant 0 : i32
    %c0_i32_0 = arith.constant 0 : i32
    return %arg0, %c0_i32 : i32, i32
  }
  func.func @transform_1(%arg0: i32) -> (i32, i32) {
    %c0_i32 = arith.constant 0 : i32
    %c0_i32_0 = arith.constant 0 : i32
    %c0_i32_1 = arith.constant 0 : i32
    return %c0_i32, %c0_i32_0 : i32, i32
  }
  func.func @transform_2(%arg0: i32) -> (i32, i32) {
    %c0_i32 = arith.constant 0 : i32
    %c0_i32_0 = arith.constant 0 : i32
    %c0_i32_1 = arith.constant 0 : i32
    return %c0_i32, %c0_i32_0 : i32, i32
  }
  func.func @transform_3(%arg0: i32) -> (i32, i32) {
    %c0_i32 = arith.constant 0 : i32
    %c0_i32_0 = arith.constant 0 : i32
    return %arg0, %c0_i32 : i32, i32
  }
}

module attributes {stable_mosaic.version = 11 : i64} {
  func.func @_conv1x1_kernel(%arg0: i32, %arg1: memref<32x128xf32, #tpu.memory_space<vmem>>, %arg2: memref<128x256xf32, #tpu.memory_space<vmem>>, %arg3: memref<1x256xf32, #tpu.memory_space<vmem>>, %arg4: memref<32x256xf32, #tpu.memory_space<vmem>>) attributes {dimension_semantics = [#tpu.dimension_semantics<parallel>], iteration_bounds = array<i64: 2>, scalar_prefetch = 0 : i64, scratch_operands = 0 : i64, tpu.core_type = #tpu.core_type<tc>, window_params = [{transform_indices = @transform_0, window_bounds = array<i64: 32, 128>}, {pipeline_mode = #tpu.pipeline_mode<synchronous>, transform_indices = @transform_1, window_bounds = array<i64: 128, 256>}, {pipeline_mode = #tpu.pipeline_mode<synchronous>, transform_indices = @transform_2, window_bounds = array<i64: 1, 256>}, {transform_indices = @transform_3, window_bounds = array<i64: 32, 256>}]} {
    %c0 = arith.constant 0 : index
    %c0_0 = arith.constant 0 : index
    %0 = vector.load %arg1[%c0, %c0_0] : memref<32x128xf32, #tpu.memory_space<vmem>>, vector<32x128xf32>
    %c0_1 = arith.constant 0 : index
    %c0_2 = arith.constant 0 : index
    %1 = vector.load %arg2[%c0_1, %c0_2] : memref<128x256xf32, #tpu.memory_space<vmem>>, vector<128x256xf32>
    %cst = arith.constant dense<0.000000e+00> : vector<32x256xf32>
    %2 = tpu.matmul %0, %1, %cst {dimension_numbers = #tpu.dot_dimension_numbers<[1], [0], [0], [1], [0, 0, 1, 1], [], []>} : vector<32x128xf32>, vector<128x256xf32>, vector<32x256xf32> -> vector<32x256xf32>
    %c0_3 = arith.constant 0 : index
    %c0_4 = arith.constant 0 : index
    %3 = vector.load %arg3[%c0_3, %c0_4] : memref<1x256xf32, #tpu.memory_space<vmem>>, vector<1x256xf32>
    %4 = vector.broadcast %3 : vector<1x256xf32> to vector<32x256xf32>
    %5 = arith.addf %2, %4 : vector<32x256xf32>
    %c0_5 = arith.constant 0 : index
    %c0_6 = arith.constant 0 : index
    %6 = vector.load %arg4[%c0_5, %c0_6] : memref<32x256xf32, #tpu.memory_space<vmem>>, vector<32x256xf32>
    tpu.vector_store %arg4[%c0_5, %c0_6], %5 {strides = array<i32>} : memref<32x256xf32, #tpu.memory_space<vmem>>, vector<32x256xf32>,
    return
  }
  func.func @transform_0(%arg0: i32) -> (i32, i32) {
    %c0_i32 = arith.constant 0 : i32
    %c0_i32_0 = arith.constant 0 : i32
    return %arg0, %c0_i32 : i32, i32
  }
  func.func @transform_1(%arg0: i32) -> (i32, i32) {
    %c0_i32 = arith.constant 0 : i32
    %c0_i32_0 = arith.constant 0 : i32
    %c0_i32_1 = arith.constant 0 : i32
    return %c0_i32, %c0_i32_0 : i32, i32
  }
  func.func @transform_2(%arg0: i32) -> (i32, i32) {
    %c0_i32 = arith.constant 0 : i32
    %c0_i32_0 = arith.constant 0 : i32
    %c0_i32_1 = arith.constant 0 : i32
    return %c0_i32, %c0_i32_0 : i32, i32
  }
  func.func @transform_3(%arg0: i32) -> (i32, i32) {
    %c0_i32 = arith.constant 0 : i32
    %c0_i32_0 = arith.constant 0 : i32
    return %arg0, %c0_i32 : i32, i32
  }
}

</mosaic_0001>

<bundles_post_ra>
// kernel: tpu_custom_call.1
= control target key start
LH: loop header
LB: loop body
LE: loop exit
PB: predicated region body
PF: predicated region fallthrough
CT: control target
= control target key end

     0   :  { %8 = vsyncpa [#allocation3], 0  ;;  %s910_s0 = inlined_call_operand.hbm [shape: f32[64,128], index: 0, kind: input, shape index: {}]   ;;  %s911_s1 = inlined_call_operand.hbm [shape: f32[128,256], index: 1, kind: input, shape index: {}]   ;;  %s912_s2 = inlined_call_operand.vmem [shape: f32[1,256], index: 2, kind: input, shape index: {}]   ;;  %s913_s3 = inlined_call_operand.hbm [shape: f32[64,256], index: 3, kind: output, shape index: {}]  }
   0x1   :  { %10 = vsyncpa [#allocation3 + $0x1], 0 }
   0x2   :  { %11 = vsyncpa [#allocation6], 0 }
   0x3   :  { %12 = vsyncpa [#allocation4], 0 }
   0x4   :  { %14 = vsyncpa [#allocation4 + $0x1], 0  ;;  %s719_s12 = smov 0   ;;  %s721_s13 = smov 0  }
   0x5   :  { %s723_s14 = smov 0   ;;  %s725_s15 = smov 0  }
   0x6 LB: > { %s740_s16 = sadd.s32 4294967295, %s687_s15   ;;  %s449_s17 = sadd.s32 4294967294, %s687_s15   ;;  %s687_s15 = sphi %s725_s15, %s935_s15   ;;  %s683_s14 = sphi %s723_s14, %s934_s14   ;;  %s679_s13 = sphi %s721_s13, %s933_s13   ;;  %s675_s12 = sphi %s719_s12, %s932_s12  }
   0x7   : > { %p40_p0 = scmp.ne.s32.totalorder %s679_s13, %s675_s12  ;;  %p914_p1 = scmp.eq.s32.totalorder %s740_s16, 0 }
   0x8   : > { %p112_p3 = scmp.eq.s32.totalorder %s449_s17, 1  ;;  %p450_p5 = scmp.ge.s32.totalorder %s687_s15, 1 }
   0x9   : > { %p749_p4 = por %p914_p1, %p40_p0  ;;  %p119_p7 = scmp.lt.s32.totalorder %s687_s15, 3 }
   0xa   : > { %p754_p6 = por %p112_p3, %p40_p0  ;;  %s689_s21 = smov [#allocation5]  }
   0xb   : > { %s918_s18 = scalar_select %p749_p4, 1, 0 }
   0xc   : > { %s919_s19 = scalar_select %p754_p6, 1, 0 }
   0xd   : > { %p759_p8 = pnand %p450_p5, %p119_p7  ;;  %s131_s22 = sshll.u32 %s689_s21, 4  ;;  %s132_s22 = int_to_ptr.vmem [resolvable:$true] %s131_s22 }
   0xe   : > { %s773_s24 = sadd.s32 1, %s687_s15   ;;  %s27_s25 = sadd.s32 1, %s683_s14 }
   0xf   : > { %s920_s20 = scalar_select %p759_p8, 1, 0 }
  0x10   : > { %p509_p9 = pneg %p759_p8  ;;  %s24_s26 = ssub.s32 %s687_s15, %s773_s24 }
  0x11   : > { %s576_s27 = scalar_lea.vmem %s132_s22, 4096  ;;  %p584_p5 = scmp.lt.s32.totalorder %s132_s22, %s132_s22 }
  0x12   : > { %p768_p11 = pnand %p509_p9, %p914_p1  ;;  %p577_p13 = scmp.ne.s32.totalorder %s132_s22, %s576_s27 }
  0x13   : > { %p585_p7 = scmp.lt.s32.totalorder %s576_s27, %s576_s27 }
  0x14   : > { %p567_p12 = pneg %p768_p11 }
  0x15   : > { %p586_p10 = por %p585_p7, %p584_p5 }
  0x16   : > { %p579_p0 = pnand %p577_p13, %p567_p12 }
  0x18   : > { %p580_p3 = pneg %p579_p0 }
  0x1a   : > { %p587_p2 = pnand %p586_p10, %p580_p3 }
  0x1c   : > { %590 = shalt.err (!%p587_p2)
}
  0x1d   : > { %s690_s28 = smov 256   ;;  %s691_s29 = smov 16  }
  0x1e   : > { %512 = dma.hbm_to_vmem [thread:$0]  (!%p768_p11), %s911_s1, 4096, %s132_s22, [#allocation6], %s690_s28, %s690_s28, %s691_s29  }
  0x1f   : > { %p25_p9 = scmp.eq.s32.totalorder %s24_s26, 0  ;;  %p34_p12 = scmp.ne.s32.totalorder %s683_s14, %s679_s13 }
  0x20   : > { %p35_p10 = scmp.eq.s32.totalorder %s687_s15, 0  ;;  %p522_p2 = scmp.lt.s32.totalorder %s687_s15, 2 }
  0x21   : > { %s790_s5 = scalar_select %p25_p9, %s683_s14, %s27_s25  }
  0x22   : > { %p36_p13 = por %p35_p10, %p34_p12  ;;  %p922_p0 = scmp.eq.s32.totalorder %s740_s16, 1 }
  0x23   : > { %s148_s7 = sand.u32 1, %s683_s14   ;;  %s466_s8 = sshll.u32 %s687_s15, 9 }
  0x24   : > { %p794_p3 = por %p922_p0, %p34_p12  ;;  %s453_s9 = sshll.u32 %s148_s7, 5 }
  0x25   : > { %s803_s17 = scalar_lea.hbm %s910_s0, %s466_s8  ;;  %s152_s21 = scalar_lea.vmem [#allocation2], %s453_s9 }
  0x26   : > { %s923_s6 = scalar_select %p794_p3, 1, 0 }
  0x27   : > { %s159_s22 = sshll.u32 %s152_s21, 4  ;;  %p805_p11 = pnand %p522_p2, %p36_p13  ;;  %s809_s22 = int_to_ptr.vmem [resolvable:$true] %s159_s22 }
  0x28   : > { %s811_s25 = scalar_lea.sflag [#allocation3], %s148_s7  ;;  %s591_s26 = scalar_lea.hbm %s803_s17, 512 }
  0x29   : > { %p592_p5 = scmp.ne.s32.totalorder %s803_s17, %s591_s26  ;;  %p593_p7 = pneg %p805_p11 }
  0x2a   : > { %s596_s29 = scalar_lea.hbm %s910_s0, 1024  ;;  %p597_p10 = scmp.lt.s32.totalorder %s803_s17, %s910_s0 }
  0x2b   : > { %p594_p9 = pnand %p593_p7, %p592_p5  ;;  %p598_p2 = scmp.lt.s32.totalorder %s596_s29, %s591_s26 }
  0x2d   : > { %p595_p12 = pneg %p594_p9  ;;  %p599_p13 = por %p598_p2, %p597_p10 }
  0x2f   : > { %p600_p0 = pnand %p599_p13, %p595_p12 }
  0x31   : > { %603 = shalt.err (!%p600_p0)
}
  0x32   : > { %s604_s7 = scalar_lea.vmem %s809_s22, 512  ;;  %s692_s8 = smov [#allocation2]  }
  0x33   : > { %p605_p1 = scmp.ne.s32.totalorder %s809_s22, %s604_s7  ;;  %s609_s9 = sshll.u32 %s692_s8, 4  ;;  %s610_s9 = int_to_ptr.vmem [resolvable:$false] %s609_s9 }
  0x34   : > { %s611_s10 = scalar_lea.vmem %s610_s9, 1024  ;;  %p612_p9 = scmp.lt.s32.totalorder %s809_s22, %s610_s9 }
  0x35   : > { %p607_p6 = pnand %p605_p1, %p593_p7  ;;  %p613_p3 = scmp.lt.s32.totalorder %s611_s10, %s604_s7 }
  0x37   : > { %p608_p5 = pneg %p607_p6  ;;  %p614_p4 = por %p613_p3, %p612_p9 }
  0x39   : > { %p615_p8 = pnand %p614_p4, %p608_p5 }
  0x3b   : > { %618 = shalt.err (!%p615_p8)
}
  0x3c   : > { %s693_s11 = smov 128   ;;  %s694_s21 = smov 8  }
  0x3d   : > { %516 = dma.hbm_to_vmem [thread:$0]  (!%p805_p11), %s803_s17, 512, %s809_s22, %s811_s25, %s693_s11, %s693_s11, %s694_s21  }
  0x3e   : > { %p925_p1 = scmp.ne.s32.totalorder %s920_s20, 0 }
  0x3f   : > { %s835_s26 = sand.u32 (!%p925_p1), 1, %s679_s13   ;;  %p926_p4 = scmp.ne.s32.totalorder (!%p925_p1), %s918_s18, 0 }
  0x40   : > { %171 = sbr.rel (%p925_p1) target bundleno = 322 (0x142), region = 32  ;;  %s457_s27 = sshll.u32 (!%p925_p1), %s835_s26, 5 }
  0x41   : > { %s174_s28 = scalar_lea.sflag (!%p925_p1), [#allocation3], %s835_s26  ;;  %s839_s29 = scalar_lea.vmem (!%p925_p1), [#allocation2], %s457_s27 }
  0x45   : > { %662 = dma.done.wait (%p926_p4), %s174_s28, 512  }
  0x46   : > { %664 = vsyncadd (%p926_p4), %s174_s28, 4294966784  ;;  %p927_p6 = scmp.eq.s32.totalorder %s740_s16, 0 }
  0x48   : > { %666 = dma.done.wait (%p927_p6), [#allocation6], 4096   ;;  %p928_p8 = pmov %p927_p6 }
  0x49   : > { %v695_v0 = vmov 0.0   ;;  %v241_v1 = vld [vmem:[#allocation5 + $0xf8] sm:$0xff]  ;;  %v240_v2 = vld [vmem:[#allocation5 + $0xf0] sm:$0xff]  ;;  %v239_v3 = vld [vmem:[#allocation5 + $0xe8] sm:$0xff]  ;;  %v244_v37 = vlaneseq  ;;  %s459_s17 = sshll.u32 %s835_s26, 6  ;;  %s468_s25 = sshll.u32 %s740_s16, 10 }
  0x4a   : > { %668 = vsyncadd (%p928_p8), [#allocation6], 4294963200  ;;  %318 = vmatprep.mubr.f32.mxu0 %v695_v0  ;;  %330 = vmatprep.mubr.f32.mxu1 %v695_v0  ;;  %v238_v4 = vld [vmem:[#allocation5 + $0xe0] sm:$0xff]  ;;  %v237_v5 = vld [vmem:[#allocation5 + $0xd8] sm:$0xff]  ;;  %s203_s22 = scalar_lea.vmem [#allocation7], %s459_s17  ;;  %s867_s7 = scalar_lea.hbm %s913_s3, %s468_s25 }
  0x4b   : > { %254 = vmatprep.subr.mxu0 %v241_v1  ;;  %469 = vmatprep.subr.mxu1 %v241_v1  ;;  %v236_v6 = vld [vmem:[#allocation5 + $0xd0] sm:$0xff]  ;;  %v235_v7 = vld [vmem:[#allocation5 + $0xc8] sm:$0xff]  ;;  %v234_v8 = vld [vmem:[#allocation5 + $0xc0] sm:$0xff]  ;;  %v245_v38 = vshrl.u32 %v244_v37, 7  ;;  %s366_s23 = sshll.u32 %s203_s22, 4  ;;  %s352_s16 = scalar_lea.sflag [#allocation4], %s835_s26  ;;  %s862_s23 = int_to_ptr.vmem [resolvable:$true] %s366_s23 }
  0x4c   : > { %255 = vmatpush1.msra.mxu0 %v240_v2  ;;  %485 = vmatpush1.msra.mxu1 %v240_v2  ;;  %v233_v9 = vld [vmem:[#allocation5 + $0xb8] sm:$0xff]  ;;  %v232_v10 = vld [vmem:[#allocation5 + $0xb0] sm:$0xff]  ;;  %v231_v11 = vld [vmem:[#allocation5 + $0xa8] sm:$0xff]  ;;  %s619_s8 = scalar_lea.vmem %s862_s23, 1024  ;;  %p929_p11 = scmp.ne.s32.totalorder %s923_s6, 0 }
  0x4d   : > { %256 = vmatprep.subr.mxu0 %v239_v3  ;;  %470 = vmatprep.subr.mxu1 %v239_v3  ;;  %v230_v12 = vld [vmem:[#allocation5 + $0xa0] sm:$0xff]  ;;  %v229_v13 = vld [vmem:[#allocation5 + $0x98] sm:$0xff]  ;;  %v228_v14 = vld [vmem:[#allocation5 + $0x90] sm:$0xff]  ;;  %v246_v39 = vsub.s32 0, %v245_v38  ;;  %v250_v41 = vsub.s32 1, %v245_v38  ;;  %p620_p3 = scmp.ne.s32.totalorder %s862_s23, %s619_s8  ;;  %s696_s9 = smov [#allocation7]  }
  0x4e   : > { %257 = vmatpush1.msra.mxu0 %v238_v4  ;;  %486 = vmatpush1.msra.mxu1 %v238_v4  ;;  %v227_v15 = vld [vmem:[#allocation5 + $0x88] sm:$0xff]  ;;  %v226_v16 = vld [vmem:[#allocation5 + $0x80] sm:$0xff]  ;;  %v225_v17 = vld [vmem:[#allocation5 + $0x78] sm:$0xff]  ;;  %s623_s10 = sshll.u32 %s696_s9, 4  ;;  %s624_s10 = int_to_ptr.vmem [resolvable:$false] %s623_s10 }
  0x4f   : > { %258 = vmatprep.subr.mxu0 %v237_v5  ;;  %471 = vmatprep.subr.mxu1 %v237_v5  ;;  %v224_v18 = vld [vmem:[#allocation5 + $0x70] sm:$0xff]  ;;  %v223_v19 = vld [vmem:[#allocation5 + $0x68] sm:$0xff]  ;;  %v222_v20 = vld [vmem:[#allocation5 + $0x60] sm:$0xff]  ;;  %p621_p7 = pnand %p620_p3, %p929_p11  ;;  %s625_s11 = scalar_lea.vmem %s624_s10, 2048 }
  0x50   : > { %259 = vmatpush1.msra.mxu0 %v236_v6  ;;  %487 = vmatpush1.msra.mxu1 %v236_v6  ;;  %v221_v21 = vld [vmem:[#allocation5 + $0x58] sm:$0xff]  ;;  %v220_v22 = vld [vmem:[#allocation5 + $0x50] sm:$0xff]  ;;  %v219_v23 = vld [vmem:[#allocation5 + $0x48] sm:$0xff]  ;;  %p626_p10 = scmp.lt.s32.totalorder %s862_s23, %s624_s10  ;;  %p627_p2 = scmp.lt.s32.totalorder %s625_s11, %s619_s8 }
  0x51   : > { %260 = vmatprep.subr.mxu0 %v235_v7  ;;  %472 = vmatprep.subr.mxu1 %v235_v7  ;;  %v218_v24 = vld [vmem:[#allocation5 + $0x40] sm:$0xff]  ;;  %v217_v25 = vld [vmem:[#allocation5 + $0x38] sm:$0xff]  ;;  %v216_v26 = vld [vmem:[#allocation5 + $0x30] sm:$0xff]  ;;  %p622_p12 = pneg %p621_p7 }
  0x52   : > { %261 = vmatpush1.msra.mxu0 %v234_v8  ;;  %488 = vmatpush1.msra.mxu1 %v234_v8  ;;  %v215_v27 = vld [vmem:[#allocation5 + $0x28] sm:$0xff]  ;;  %v214_v28 = vld [vmem:[#allocation5 + $0x20] sm:$0xff]  ;;  %v213_v29 = vld [vmem:[#allocation5 + $0x18] sm:$0xff]  ;;  %p628_p13 = por %p627_p2, %p626_p10 }
  0x53   : > { %262 = vmatprep.subr.mxu0 %v233_v9  ;;  %473 = vmatprep.subr.mxu1 %v233_v9  ;;  %v212_v30 = vld [vmem:[#allocation5 + $0x10] sm:$0xff]  ;;  %v211_v31 = vld [vmem:[#allocation5 + $0x8] sm:$0xff]  ;;  %v210_v32 = vld [vmem:[#allocation5] sm:$0xff] }
  0x54   : > { %263 = vmatpush1.msra.mxu0 %v232_v10  ;;  %489 = vmatpush1.msra.mxu1 %v232_v10  ;;  %v206_v33 = vld [vmem:[%s839_s29] sm:$0xff]  ;;  %v208_v34 = vld [vmem:[%s839_s29 + $0x10] sm:$0xff]  ;;  %v207_v35 = vld [vmem:[%s839_s29 + $0x8] sm:$0xff]  ;;  %p629_p0 = pnand %p628_p13, %p622_p12 }
  0x55   : > { %264 = vmatprep.subr.mxu0 %v231_v11  ;;  %474 = vmatprep.subr.mxu1 %v231_v11  ;;  %v209_v36 = vld [vmem:[%s839_s29 + $0x18] sm:$0xff]  ;;  %v242_v40 = vld [vmem:[%s912_s2] sm:$0x3] }
  0x56   : > { %265 = vmatpush1.msra.mxu0 %v230_v12  ;;  %490 = vmatpush1.msra.mxu1 %v230_v12  ;;  %v247_v42 = vrot.slane %v242_v40, %v246_v39  ;;  %v251_v43 = vrot.slane %v242_v40, %v250_v41 }
  0x57   : > { %266 = vmatprep.subr.mxu0 %v229_v13  ;;  %475 = vmatprep.subr.mxu1 %v229_v13 }
  0x58   : > { %267 = vmatpush1.msra.mxu0 %v228_v14  ;;  %491 = vmatpush1.msra.mxu1 %v228_v14 }
  0x59   : > { %268 = vmatprep.subr.mxu0 %v227_v15  ;;  %476 = vmatprep.subr.mxu1 %v227_v15 }
  0x5a   : > { %269 = vmatpush1.msra.mxu0 %v226_v16  ;;  %492 = vmatpush1.msra.mxu1 %v226_v16 }
  0x5b   : > { %270 = vmatprep.subr.mxu0 %v225_v17  ;;  %477 = vmatprep.subr.mxu1 %v225_v17 }
  0x5c   : > { %271 = vmatpush1.msra.mxu0 %v224_v18  ;;  %493 = vmatpush1.msra.mxu1 %v224_v18 }
  0x5d   : > { %272 = vmatprep.subr.mxu0 %v223_v19  ;;  %478 = vmatprep.subr.mxu1 %v223_v19 }
  0x5e   : > { %273 = vmatpush1.msra.mxu0 %v222_v20  ;;  %494 = vmatpush1.msra.mxu1 %v222_v20 }
  0x5f   : > { %274 = vmatprep.subr.mxu0 %v221_v21  ;;  %479 = vmatprep.subr.mxu1 %v221_v21 }
  0x60   : > { %275 = vmatpush1.msra.mxu0 %v220_v22  ;;  %495 = vmatpush1.msra.mxu1 %v220_v22 }
  0x61   : > { %276 = vmatprep.subr.mxu0 %v219_v23  ;;  %480 = vmatprep.subr.mxu1 %v219_v23 }
  0x62   : > { %277 = vmatpush1.msra.mxu0 %v218_v24  ;;  %496 = vmatpush1.msra.mxu1 %v218_v24 }
  0x63   : > { %278 = vmatprep.subr.mxu0 %v217_v25  ;;  %481 = vmatprep.subr.mxu1 %v217_v25 }
  0x64   : > { %279 = vmatpush1.msra.mxu0 %v216_v26  ;;  %497 = vmatpush1.msra.mxu1 %v216_v26 }
  0x65   : > { %280 = vmatprep.subr.mxu0 %v215_v27  ;;  %482 = vmatprep.subr.mxu1 %v215_v27 }
  0x66   : > { %281 = vmatpush1.msra.mxu0 %v214_v28  ;;  %498 = vmatpush1.msra.mxu1 %v214_v28 }
  0x67   : > { %282 = vmatprep.subr.mxu0 %v213_v29  ;;  %483 = vmatprep.subr.mxu1 %v213_v29 }
  0x68   : > { %283 = vmatpush1.msra.mxu0 %v212_v30  ;;  %499 = vmatpush1.msra.mxu1 %v212_v30 }
  0x69   : > { %284 = vmatprep.subr.mxu0 %v211_v31  ;;  %484 = vmatprep.subr.mxu1 %v211_v31 }
  0x6a   : > { %285 = vmatpush1.msra.mxu0 %v210_v32  ;;  %500 = vmatpush1.msra.mxu1 %v210_v32 }
  0x6b   : > { %319 = vmatmul.mubr.f32.vlgmr.msra.gmra.mxu0 %v206_v33  ;;  %331 = vmatmul.mubr.f32.vlgmr.msra.gmra.mxu1 %v208_v34 }
  0x6c   : > { %324 = vmatprep.mubr.f32.mxu0 %v695_v0  ;;  %336 = vmatprep.mubr.f32.mxu1 %v695_v0 }
  0x6f   : > { %325 = vmatmul.mubr.f32.gmra.mxu0 %v207_v35  ;;  %337 = vmatmul.mubr.f32.gmra.mxu1 %v209_v36 }
 0x12b   : > { %v320_v44 = vpop.f32.mrf.mxu0  ;;  %v332_v45 = vpop.f32.mrf.mxu1 }
 0x12c   : > { %v321_v46 = vadd.f32 %v320_v44, %v247_v42  ;;  %v333_v47 = vadd.f32 %v332_v45, %v247_v42 }
 0x12d   : > { %v322_v48 = vpop.f32.mrf.mxu0  ;;  %v334_v49 = vpop.f32.mrf.mxu1 }
 0x12e   : > { %343 = vst [vmem:[%s203_s22] sm:$0xff] %v321_v46  ;;  %347 = vst [vmem:[%s203_s22 + $0x20] sm:$0xff] %v333_v47  ;;  %v323_v50 = vadd.f32 %v322_v48, %v251_v43  ;;  %v335_v51 = vadd.f32 %v334_v49, %v251_v43 }
 0x12f   : > { %v326_v52 = vpop.f32.mrf.mxu0  ;;  %v338_v53 = vpop.f32.mrf.mxu1 }
 0x130   : > { %344 = vst [vmem:[%s203_s22 + $0x8] sm:$0xff] %v323_v50  ;;  %348 = vst [vmem:[%s203_s22 + $0x28] sm:$0xff] %v335_v51  ;;  %v327_v54 = vadd.f32 %v326_v52, %v247_v42  ;;  %v339_v55 = vadd.f32 %v338_v53, %v247_v42 }
 0x131   : > { %v328_v56 = vpop.f32.mrf.mxu0  ;;  %v340_v57 = vpop.f32.mrf.mxu1 }
 0x132   : > { %345 = vst [vmem:[%s203_s22 + $0x10] sm:$0xff] %v327_v54  ;;  %349 = vst [vmem:[%s203_s22 + $0x30] sm:$0xff] %v339_v55  ;;  %v329_v58 = vadd.f32 %v328_v56, %v251_v43  ;;  %v341_v59 = vadd.f32 %v340_v57, %v251_v43 }
 0x134   : > { %346 = vst [vmem:[%s203_s22 + $0x18] sm:$0xff] %v329_v58  ;;  %350 = vst [vmem:[%s203_s22 + $0x38] sm:$0xff] %v341_v59 }
 0x135   : > { %632 = shalt.err (!%p629_p0)
}
 0x136   : > { %s633_s21 = scalar_lea.hbm %s867_s7, 1024  ;;  %s637_s29 = scalar_lea.hbm %s913_s3, 2048 }
 0x137   : > { %p634_p5 = scmp.ne.s32.totalorder %s867_s7, %s633_s21  ;;  %p638_p4 = scmp.lt.s32.totalorder %s867_s7, %s913_s3 }
 0x138   : > { %p639_p6 = scmp.lt.s32.totalorder %s637_s29, %s633_s21 }
 0x139   : > { %p635_p9 = pnand %p634_p5, %p929_p11 }
 0x13a   : > { %p640_p8 = por %p639_p6, %p638_p4 }
 0x13b   : > { %p636_p1 = pneg %p635_p9 }
 0x13d   : > { %p641_p3 = pnand %p640_p8, %p636_p1 }
 0x13f   : > { %644 = shalt.err (!%p641_p3)
}
 0x140   : > { %s697_s17 = smov 256   ;;  %s698_s22 = smov 16  }
 0x141   : > { %507 = dma.vmem_to_hbm [thread:$0]  (%p929_p11), %s862_s23, 1024, %s867_s7, %s352_s16, %s697_s17, %s697_s17, %s698_s22  }
 0x142 PF: > { %s381_s25 = sand.u32 1, %s675_s12   ;;  %p930_p7 = scmp.ne.s32.totalorder %s919_s19, 0 }
 0x143   : > { %p931_p12 = scmp.ge.s32.totalorder %s687_s15, 2  ;;  %s382_s30 = scalar_lea.sflag [#allocation4], %s381_s25 }
 0x145   : > { %p518_p10 = pnand %p931_p12, %p930_p7 }
 0x147   : > { %p519_p2 = pneg %p518_p10 }
 0x149   : > { %670 = dma.done.wait (%p519_p2), %s382_s30, 1024  }
 0x14a   : > { %672 = vsyncadd (%p519_p2), %s382_s30, 4294966272  ;;  %p17_p13 = scmp.ge.s32.totalorder %s773_s24, 4   ;;  %s932_s12 = smov %s679_s13 }
 0x14b   : > { %s933_s13 = smov %s683_s14  ;;  %s934_s14 = smov %s790_s5 }
 0x14c   : > { %s935_s15 = smov %s773_s24  ;;  %19 = sbr.rel (!%p17_p13) target bundleno = 6 (0x6), region = 81 }
 0x151   :  { %387 = vsyncpa [#allocation3], 1 }
 0x152   :  { %389 = vsyncpa [#allocation3 + $0x1], 1 }
 0x153   :  { %390 = vsyncpa [#allocation6], 1 }
 0x154   :  { %391 = vsyncpa [#allocation4], 1 }
 0x155   :  { %393 = vsyncpa [#allocation4 + $0x1], 1 }

// kernel: tpu_custom_call.1
= control target key start
LH: loop header
LB: loop body
LE: loop exit
PB: predicated region body
PF: predicated region fallthrough
CT: control target
= control target key end

     0   :  { %8 = vsyncpa [#allocation3], 0  ;;  %s910_s0 = inlined_call_operand.hbm [shape: f32[64,128], index: 0, kind: input, shape index: {}]   ;;  %s911_s1 = inlined_call_operand.hbm [shape: f32[128,256], index: 1, kind: input, shape index: {}]   ;;  %s912_s2 = inlined_call_operand.vmem [shape: f32[1,256], index: 2, kind: input, shape index: {}]   ;;  %s913_s3 = inlined_call_operand.hbm [shape: f32[64,256], index: 3, kind: output, shape index: {}]  }
   0x1   :  { %10 = vsyncpa [#allocation3 + $0x1], 0 }
   0x2   :  { %11 = vsyncpa [#allocation6], 0 }
   0x3   :  { %12 = vsyncpa [#allocation4], 0 }
   0x4   :  { %14 = vsyncpa [#allocation4 + $0x1], 0  ;;  %s719_s12 = smov 0   ;;  %s721_s13 = smov 0  }
   0x5   :  { %s723_s14 = smov 0   ;;  %s725_s15 = smov 0  }
   0x6 LB: > { %s740_s16 = sadd.s32 4294967295, %s687_s15   ;;  %s449_s17 = sadd.s32 4294967294, %s687_s15   ;;  %s687_s15 = sphi %s725_s15, %s935_s15   ;;  %s683_s14 = sphi %s723_s14, %s934_s14   ;;  %s679_s13 = sphi %s721_s13, %s933_s13   ;;  %s675_s12 = sphi %s719_s12, %s932_s12  }
   0x7   : > { %p40_p0 = scmp.ne.s32.totalorder %s679_s13, %s675_s12  ;;  %p914_p1 = scmp.eq.s32.totalorder %s740_s16, 0 }
   0x8   : > { %p112_p3 = scmp.eq.s32.totalorder %s449_s17, 1  ;;  %p450_p5 = scmp.ge.s32.totalorder %s687_s15, 1 }
   0x9   : > { %p749_p4 = por %p914_p1, %p40_p0  ;;  %p119_p7 = scmp.lt.s32.totalorder %s687_s15, 3 }
   0xa   : > { %p754_p6 = por %p112_p3, %p40_p0  ;;  %s689_s21 = smov [#allocation5]  }
   0xb   : > { %s918_s18 = scalar_select %p749_p4, 1, 0 }
   0xc   : > { %s919_s19 = scalar_select %p754_p6, 1, 0 }
   0xd   : > { %p759_p8 = pnand %p450_p5, %p119_p7  ;;  %s131_s22 = sshll.u32 %s689_s21, 4  ;;  %s132_s22 = int_to_ptr.vmem [resolvable:$true] %s131_s22 }
   0xe   : > { %s773_s24 = sadd.s32 1, %s687_s15   ;;  %s27_s25 = sadd.s32 1, %s683_s14 }
   0xf   : > { %s920_s20 = scalar_select %p759_p8, 1, 0 }
  0x10   : > { %p509_p9 = pneg %p759_p8  ;;  %s24_s26 = ssub.s32 %s687_s15, %s773_s24 }
  0x11   : > { %s576_s27 = scalar_lea.vmem %s132_s22, 4096  ;;  %p584_p5 = scmp.lt.s32.totalorder %s132_s22, %s132_s22 }
  0x12   : > { %p768_p11 = pnand %p509_p9, %p914_p1  ;;  %p577_p13 = scmp.ne.s32.totalorder %s132_s22, %s576_s27 }
  0x13   : > { %p585_p7 = scmp.lt.s32.totalorder %s576_s27, %s576_s27 }
  0x14   : > { %p567_p12 = pneg %p768_p11 }
  0x15   : > { %p586_p10 = por %p585_p7, %p584_p5 }
  0x16   : > { %p579_p0 = pnand %p577_p13, %p567_p12 }
  0x18   : > { %p580_p3 = pneg %p579_p0 }
  0x1a   : > { %p587_p2 = pnand %p586_p10, %p580_p3 }
  0x1c   : > { %590 = shalt.err (!%p587_p2)
}
  0x1d   : > { %s690_s28 = smov 256   ;;  %s691_s29 = smov 16  }
  0x1e   : > { %512 = dma.hbm_to_vmem [thread:$0]  (!%p768_p11), %s911_s1, 4096, %s132_s22, [#allocation6], %s690_s28, %s690_s28, %s691_s29  }
  0x1f   : > { %p25_p9 = scmp.eq.s32.totalorder %s24_s26, 0  ;;  %p34_p12 = scmp.ne.s32.totalorder %s683_s14, %s679_s13 }
  0x20   : > { %p35_p10 = scmp.eq.s32.totalorder %s687_s15, 0  ;;  %p522_p2 = scmp.lt.s32.totalorder %s687_s15, 2 }
  0x21   : > { %s790_s5 = scalar_select %p25_p9, %s683_s14, %s27_s25  }
  0x22   : > { %p36_p13 = por %p35_p10, %p34_p12  ;;  %p922_p0 = scmp.eq.s32.totalorder %s740_s16, 1 }
  0x23   : > { %s148_s7 = sand.u32 1, %s683_s14   ;;  %s466_s8 = sshll.u32 %s687_s15, 9 }
  0x24   : > { %p794_p3 = por %p922_p0, %p34_p12  ;;  %s453_s9 = sshll.u32 %s148_s7, 5 }
  0x25   : > { %s803_s17 = scalar_lea.hbm %s910_s0, %s466_s8  ;;  %s152_s21 = scalar_lea.vmem [#allocation2], %s453_s9 }
  0x26   : > { %s923_s6 = scalar_select %p794_p3, 1, 0 }
  0x27   : > { %s159_s22 = sshll.u32 %s152_s21, 4  ;;  %p805_p11 = pnand %p522_p2, %p36_p13  ;;  %s809_s22 = int_to_ptr.vmem [resolvable:$true] %s159_s22 }
  0x28   : > { %s811_s25 = scalar_lea.sflag [#allocation3], %s148_s7  ;;  %s591_s26 = scalar_lea.hbm %s803_s17, 512 }
  0x29   : > { %p592_p5 = scmp.ne.s32.totalorder %s803_s17, %s591_s26  ;;  %p593_p7 = pneg %p805_p11 }
  0x2a   : > { %s596_s29 = scalar_lea.hbm %s910_s0, 1024  ;;  %p597_p10 = scmp.lt.s32.totalorder %s803_s17, %s910_s0 }
  0x2b   : > { %p594_p9 = pnand %p593_p7, %p592_p5  ;;  %p598_p2 = scmp.lt.s32.totalorder %s596_s29, %s591_s26 }
  0x2d   : > { %p595_p12 = pneg %p594_p9  ;;  %p599_p13 = por %p598_p2, %p597_p10 }
  0x2f   : > { %p600_p0 = pnand %p599_p13, %p595_p12 }
  0x31   : > { %603 = shalt.err (!%p600_p0)
}
  0x32   : > { %s604_s7 = scalar_lea.vmem %s809_s22, 512  ;;  %s692_s8 = smov [#allocation2]  }
  0x33   : > { %p605_p1 = scmp.ne.s32.totalorder %s809_s22, %s604_s7  ;;  %s609_s9 = sshll.u32 %s692_s8, 4  ;;  %s610_s9 = int_to_ptr.vmem [resolvable:$false] %s609_s9 }
  0x34   : > { %s611_s10 = scalar_lea.vmem %s610_s9, 1024  ;;  %p612_p9 = scmp.lt.s32.totalorder %s809_s22, %s610_s9 }
  0x35   : > { %p607_p6 = pnand %p605_p1, %p593_p7  ;;  %p613_p3 = scmp.lt.s32.totalorder %s611_s10, %s604_s7 }
  0x37   : > { %p608_p5 = pneg %p607_p6  ;;  %p614_p4 = por %p613_p3, %p612_p9 }
  0x39   : > { %p615_p8 = pnand %p614_p4, %p608_p5 }
  0x3b   : > { %618 = shalt.err (!%p615_p8)
}
  0x3c   : > { %s693_s11 = smov 128   ;;  %s694_s21 = smov 8  }
  0x3d   : > { %516 = dma.hbm_to_vmem [thread:$0]  (!%p805_p11), %s803_s17, 512, %s809_s22, %s811_s25, %s693_s11, %s693_s11, %s694_s21  }
  0x3e   : > { %p925_p1 = scmp.ne.s32.totalorder %s920_s20, 0 }
  0x3f   : > { %s835_s26 = sand.u32 (!%p925_p1), 1, %s679_s13   ;;  %p926_p4 = scmp.ne.s32.totalorder (!%p925_p1), %s918_s18, 0 }
  0x40   : > { %171 = sbr.rel (%p925_p1) target bundleno = 322 (0x142), region = 32  ;;  %s457_s27 = sshll.u32 (!%p925_p1), %s835_s26, 5 }
  0x41   : > { %s174_s28 = scalar_lea.sflag (!%p925_p1), [#allocation3], %s835_s26  ;;  %s839_s29 = scalar_lea.vmem (!%p925_p1), [#allocation2], %s457_s27 }
  0x45   : > { %662 = dma.done.wait (%p926_p4), %s174_s28, 512  }
  0x46   : > { %664 = vsyncadd (%p926_p4), %s174_s28, 4294966784  ;;  %p927_p6 = scmp.eq.s32.totalorder %s740_s16, 0 }
  0x48   : > { %666 = dma.done.wait (%p927_p6), [#allocation6], 4096   ;;  %p928_p8 = pmov %p927_p6 }
  0x49   : > { %v695_v0 = vmov 0.0   ;;  %v241_v1 = vld [vmem:[#allocation5 + $0xf8] sm:$0xff]  ;;  %v240_v2 = vld [vmem:[#allocation5 + $0xf0] sm:$0xff]  ;;  %v239_v3 = vld [vmem:[#allocation5 + $0xe8] sm:$0xff]  ;;  %v244_v37 = vlaneseq  ;;  %s459_s17 = sshll.u32 %s835_s26, 6  ;;  %s468_s25 = sshll.u32 %s740_s16, 10 }
  0x4a   : > { %668 = vsyncadd (%p928_p8), [#allocation6], 4294963200  ;;  %318 = vmatprep.mubr.f32.mxu0 %v695_v0  ;;  %330 = vmatprep.mubr.f32.mxu1 %v695_v0  ;;  %v238_v4 = vld [vmem:[#allocation5 + $0xe0] sm:$0xff]  ;;  %v237_v5 = vld [vmem:[#allocation5 + $0xd8] sm:$0xff]  ;;  %s203_s22 = scalar_lea.vmem [#allocation7], %s459_s17  ;;  %s867_s7 = scalar_lea.hbm %s913_s3, %s468_s25 }
  0x4b   : > { %254 = vmatprep.subr.mxu0 %v241_v1  ;;  %469 = vmatprep.subr.mxu1 %v241_v1  ;;  %v236_v6 = vld [vmem:[#allocation5 + $0xd0] sm:$0xff]  ;;  %v235_v7 = vld [vmem:[#allocation5 + $0xc8] sm:$0xff]  ;;  %v234_v8 = vld [vmem:[#allocation5 + $0xc0] sm:$0xff]  ;;  %v245_v38 = vshrl.u32 %v244_v37, 7  ;;  %s366_s23 = sshll.u32 %s203_s22, 4  ;;  %s352_s16 = scalar_lea.sflag [#allocation4], %s835_s26  ;;  %s862_s23 = int_to_ptr.vmem [resolvable:$true] %s366_s23 }
  0x4c   : > { %255 = vmatpush1.msra.mxu0 %v240_v2  ;;  %485 = vmatpush1.msra.mxu1 %v240_v2  ;;  %v233_v9 = vld [vmem:[#allocation5 + $0xb8] sm:$0xff]  ;;  %v232_v10 = vld [vmem:[#allocation5 + $0xb0] sm:$0xff]  ;;  %v231_v11 = vld [vmem:[#allocation5 + $0xa8] sm:$0xff]  ;;  %s619_s8 = scalar_lea.vmem %s862_s23, 1024  ;;  %p929_p11 = scmp.ne.s32.totalorder %s923_s6, 0 }
  0x4d   : > { %256 = vmatprep.subr.mxu0 %v239_v3  ;;  %470 = vmatprep.subr.mxu1 %v239_v3  ;;  %v230_v12 = vld [vmem:[#allocation5 + $0xa0] sm:$0xff]  ;;  %v229_v13 = vld [vmem:[#allocation5 + $0x98] sm:$0xff]  ;;  %v228_v14 = vld [vmem:[#allocation5 + $0x90] sm:$0xff]  ;;  %v246_v39 = vsub.s32 0, %v245_v38  ;;  %v250_v41 = vsub.s32 1, %v245_v38  ;;  %p620_p3 = scmp.ne.s32.totalorder %s862_s23, %s619_s8  ;;  %s696_s9 = smov [#allocation7]  }
  0x4e   : > { %257 = vmatpush1.msra.mxu0 %v238_v4  ;;  %486 = vmatpush1.msra.mxu1 %v238_v4  ;;  %v227_v15 = vld [vmem:[#allocation5 + $0x88] sm:$0xff]  ;;  %v226_v16 = vld [vmem:[#allocation5 + $0x80] sm:$0xff]  ;;  %v225_v17 = vld [vmem:[#allocation5 + $0x78] sm:$0xff]  ;;  %s623_s10 = sshll.u32 %s696_s9, 4  ;;  %s624_s10 = int_to_ptr.vmem [resolvable:$false] %s623_s10 }
  0x4f   : > { %258 = vmatprep.subr.mxu0 %v237_v5  ;;  %471 = vmatprep.subr.mxu1 %v237_v5  ;;  %v224_v18 = vld [vmem:[#allocation5 + $0x70] sm:$0xff]  ;;  %v223_v19 = vld [vmem:[#allocation5 + $0x68] sm:$0xff]  ;;  %v222_v20 = vld [vmem:[#allocation5 + $0x60] sm:$0xff]  ;;  %p621_p7 = pnand %p620_p3, %p929_p11  ;;  %s625_s11 = scalar_lea.vmem %s624_s10, 2048 }
  0x50   : > { %259 = vmatpush1.msra.mxu0 %v236_v6  ;;  %487 = vmatpush1.msra.mxu1 %v236_v6  ;;  %v221_v21 = vld [vmem:[#allocation5 + $0x58] sm:$0xff]  ;;  %v220_v22 = vld [vmem:[#allocation5 + $0x50] sm:$0xff]  ;;  %v219_v23 = vld [vmem:[#allocation5 + $0x48] sm:$0xff]  ;;  %p626_p10 = scmp.lt.s32.totalorder %s862_s23, %s624_s10  ;;  %p627_p2 = scmp.lt.s32.totalorder %s625_s11, %s619_s8 }
  0x51   : > { %260 = vmatprep.subr.mxu0 %v235_v7  ;;  %472 = vmatprep.subr.mxu1 %v235_v7  ;;  %v218_v24 = vld [vmem:[#allocation5 + $0x40] sm:$0xff]  ;;  %v217_v25 = vld [vmem:[#allocation5 + $0x38] sm:$0xff]  ;;  %v216_v26 = vld [vmem:[#allocation5 + $0x30] sm:$0xff]  ;;  %p622_p12 = pneg %p621_p7 }
  0x52   : > { %261 = vmatpush1.msra.mxu0 %v234_v8  ;;  %488 = vmatpush1.msra.mxu1 %v234_v8  ;;  %v215_v27 = vld [vmem:[#allocation5 + $0x28] sm:$0xff]  ;;  %v214_v28 = vld [vmem:[#allocation5 + $0x20] sm:$0xff]  ;;  %v213_v29 = vld [vmem:[#allocation5 + $0x18] sm:$0xff]  ;;  %p628_p13 = por %p627_p2, %p626_p10 }
  0x53   : > { %262 = vmatprep.subr.mxu0 %v233_v9  ;;  %473 = vmatprep.subr.mxu1 %v233_v9  ;;  %v212_v30 = vld [vmem:[#allocation5 + $0x10] sm:$0xff]  ;;  %v211_v31 = vld [vmem:[#allocation5 + $0x8] sm:$0xff]  ;;  %v210_v32 = vld [vmem:[#allocation5] sm:$0xff] }
  0x54   : > { %263 = vmatpush1.msra.mxu0 %v232_v10  ;;  %489 = vmatpush1.msra.mxu1 %v232_v10  ;;  %v206_v33 = vld [vmem:[%s839_s29] sm:$0xff]  ;;  %v208_v34 = vld [vmem:[%s839_s29 + $0x10] sm:$0xff]  ;;  %v207_v35 = vld [vmem:[%s839_s29 + $0x8] sm:$0xff]  ;;  %p629_p0 = pnand %p628_p13, %p622_p12 }
  0x55   : > { %264 = vmatprep.subr.mxu0 %v231_v11  ;;  %474 = vmatprep.subr.mxu1 %v231_v11  ;;  %v209_v36 = vld [vmem:[%s839_s29 + $0x18] sm:$0xff]  ;;  %v242_v40 = vld [vmem:[%s912_s2] sm:$0x3] }
  0x56   : > { %265 = vmatpush1.msra.mxu0 %v230_v12  ;;  %490 = vmatpush1.msra.mxu1 %v230_v12  ;;  %v247_v42 = vrot.slane %v242_v40, %v246_v39  ;;  %v251_v43 = vrot.slane %v242_v40, %v250_v41 }
  0x57   : > { %266 = vmatprep.subr.mxu0 %v229_v13  ;;  %475 = vmatprep.subr.mxu1 %v229_v13 }
  0x58   : > { %267 = vmatpush1.msra.mxu0 %v228_v14  ;;  %491 = vmatpush1.msra.mxu1 %v228_v14 }
  0x59   : > { %268 = vmatprep.subr.mxu0 %v227_v15  ;;  %476 = vmatprep.subr.mxu1 %v227_v15 }
  0x5a   : > { %269 = vmatpush1.msra.mxu0 %v226_v16  ;;  %492 = vmatpush1.msra.mxu1 %v226_v16 }
  0x5b   : > { %270 = vmatprep.subr.mxu0 %v225_v17  ;;  %477 = vmatprep.subr.mxu1 %v225_v17 }
  0x5c   : > { %271 = vmatpush1.msra.mxu0 %v224_v18  ;;  %493 = vmatpush1.msra.mxu1 %v224_v18 }
  0x5d   : > { %272 = vmatprep.subr.mxu0 %v223_v19  ;;  %478 = vmatprep.subr.mxu1 %v223_v19 }
  0x5e   : > { %273 = vmatpush1.msra.mxu0 %v222_v20  ;;  %494 = vmatpush1.msra.mxu1 %v222_v20 }
  0x5f   : > { %274 = vmatprep.subr.mxu0 %v221_v21  ;;  %479 = vmatprep.subr.mxu1 %v221_v21 }
  0x60   : > { %275 = vmatpush1.msra.mxu0 %v220_v22  ;;  %495 = vmatpush1.msra.mxu1 %v220_v22 }
  0x61   : > { %276 = vmatprep.subr.mxu0 %v219_v23  ;;  %480 = vmatprep.subr.mxu1 %v219_v23 }
  0x62   : > { %277 = vmatpush1.msra.mxu0 %v218_v24  ;;  %496 = vmatpush1.msra.mxu1 %v218_v24 }
  0x63   : > { %278 = vmatprep.subr.mxu0 %v217_v25  ;;  %481 = vmatprep.subr.mxu1 %v217_v25 }
  0x64   : > { %279 = vmatpush1.msra.mxu0 %v216_v26  ;;  %497 = vmatpush1.msra.mxu1 %v216_v26 }
  0x65   : > { %280 = vmatprep.subr.mxu0 %v215_v27  ;;  %482 = vmatprep.subr.mxu1 %v215_v27 }
  0x66   : > { %281 = vmatpush1.msra.mxu0 %v214_v28  ;;  %498 = vmatpush1.msra.mxu1 %v214_v28 }
  0x67   : > { %282 = vmatprep.subr.mxu0 %v213_v29  ;;  %483 = vmatprep.subr.mxu1 %v213_v29 }
  0x68   : > { %283 = vmatpush1.msra.mxu0 %v212_v30  ;;  %499 = vmatpush1.msra.mxu1 %v212_v30 }
  0x69   : > { %284 = vmatprep.subr.mxu0 %v211_v31  ;;  %484 = vmatprep.subr.mxu1 %v211_v31 }
  0x6a   : > { %285 = vmatpush1.msra.mxu0 %v210_v32  ;;  %500 = vmatpush1.msra.mxu1 %v210_v32 }
  0x6b   : > { %319 = vmatmul.mubr.f32.vlgmr.msra.gmra.mxu0 %v206_v33  ;;  %331 = vmatmul.mubr.f32.vlgmr.msra.gmra.mxu1 %v208_v34 }
  0x6c   : > { %324 = vmatprep.mubr.f32.mxu0 %v695_v0  ;;  %336 = vmatprep.mubr.f32.mxu1 %v695_v0 }
  0x6f   : > { %325 = vmatmul.mubr.f32.gmra.mxu0 %v207_v35  ;;  %337 = vmatmul.mubr.f32.gmra.mxu1 %v209_v36 }
 0x12b   : > { %v320_v44 = vpop.f32.mrf.mxu0  ;;  %v332_v45 = vpop.f32.mrf.mxu1 }
 0x12c   : > { %v321_v46 = vadd.f32 %v320_v44, %v247_v42  ;;  %v333_v47 = vadd.f32 %v332_v45, %v247_v42 }
 0x12d   : > { %v322_v48 = vpop.f32.mrf.mxu0  ;;  %v334_v49 = vpop.f32.mrf.mxu1 }
 0x12e   : > { %343 = vst [vmem:[%s203_s22] sm:$0xff] %v321_v46  ;;  %347 = vst [vmem:[%s203_s22 + $0x20] sm:$0xff] %v333_v47  ;;  %v323_v50 = vadd.f32 %v322_v48, %v251_v43  ;;  %v335_v51 = vadd.f32 %v334_v49, %v251_v43 }
 0x12f   : > { %v326_v52 = vpop.f32.mrf.mxu0  ;;  %v338_v53 = vpop.f32.mrf.mxu1 }
 0x130   : > { %344 = vst [vmem:[%s203_s22 + $0x8] sm:$0xff] %v323_v50  ;;  %348 = vst [vmem:[%s203_s22 + $0x28] sm:$0xff] %v335_v51  ;;  %v327_v54 = vadd.f32 %v326_v52, %v247_v42  ;;  %v339_v55 = vadd.f32 %v338_v53, %v247_v42 }
 0x131   : > { %v328_v56 = vpop.f32.mrf.mxu0  ;;  %v340_v57 = vpop.f32.mrf.mxu1 }
 0x132   : > { %345 = vst [vmem:[%s203_s22 + $0x10] sm:$0xff] %v327_v54  ;;  %349 = vst [vmem:[%s203_s22 + $0x30] sm:$0xff] %v339_v55  ;;  %v329_v58 = vadd.f32 %v328_v56, %v251_v43  ;;  %v341_v59 = vadd.f32 %v340_v57, %v251_v43 }
 0x134   : > { %346 = vst [vmem:[%s203_s22 + $0x18] sm:$0xff] %v329_v58  ;;  %350 = vst [vmem:[%s203_s22 + $0x38] sm:$0xff] %v341_v59 }
 0x135   : > { %632 = shalt.err (!%p629_p0)
}
 0x136   : > { %s633_s21 = scalar_lea.hbm %s867_s7, 1024  ;;  %s637_s29 = scalar_lea.hbm %s913_s3, 2048 }
 0x137   : > { %p634_p5 = scmp.ne.s32.totalorder %s867_s7, %s633_s21  ;;  %p638_p4 = scmp.lt.s32.totalorder %s867_s7, %s913_s3 }
 0x138   : > { %p639_p6 = scmp.lt.s32.totalorder %s637_s29, %s633_s21 }
 0x139   : > { %p635_p9 = pnand %p634_p5, %p929_p11 }
 0x13a   : > { %p640_p8 = por %p639_p6, %p638_p4 }
 0x13b   : > { %p636_p1 = pneg %p635_p9 }
 0x13d   : > { %p641_p3 = pnand %p640_p8, %p636_p1 }
 0x13f   : > { %644 = shalt.err (!%p641_p3)
}
 0x140   : > { %s697_s17 = smov 256   ;;  %s698_s22 = smov 16  }
 0x141   : > { %507 = dma.vmem_to_hbm [thread:$0]  (%p929_p11), %s862_s23, 1024, %s867_s7, %s352_s16, %s697_s17, %s697_s17, %s698_s22  }
 0x142 PF: > { %s381_s25 = sand.u32 1, %s675_s12   ;;  %p930_p7 = scmp.ne.s32.totalorder %s919_s19, 0 }
 0x143   : > { %p931_p12 = scmp.ge.s32.totalorder %s687_s15, 2  ;;  %s382_s30 = scalar_lea.sflag [#allocation4], %s381_s25 }
 0x145   : > { %p518_p10 = pnand %p931_p12, %p930_p7 }
 0x147   : > { %p519_p2 = pneg %p518_p10 }
 0x149   : > { %670 = dma.done.wait (%p519_p2), %s382_s30, 1024  }
 0x14a   : > { %672 = vsyncadd (%p519_p2), %s382_s30, 4294966272  ;;  %p17_p13 = scmp.ge.s32.totalorder %s773_s24, 4   ;;  %s932_s12 = smov %s679_s13 }
 0x14b   : > { %s933_s13 = smov %s683_s14  ;;  %s934_s14 = smov %s790_s5 }
 0x14c   : > { %s935_s15 = smov %s773_s24  ;;  %19 = sbr.rel (!%p17_p13) target bundleno = 6 (0x6), region = 81 }
 0x151   :  { %387 = vsyncpa [#allocation3], 1 }
 0x152   :  { %389 = vsyncpa [#allocation3 + $0x1], 1 }
 0x153   :  { %390 = vsyncpa [#allocation6], 1 }
 0x154   :  { %391 = vsyncpa [#allocation4], 1 }
 0x155   :  { %393 = vsyncpa [#allocation4 + $0x1], 1 }

</bundles_post_ra>
